<compile_context>
chip_gen: v7x
topology: tpu7x:2x2x1
jax: 0.10.0
libtpu: 0.0.40
codegen_flags: <defaults>
</compile_context>

<pallas_src>
import jax
import jax.numpy as jnp
from jax.experimental import pallas as pl
from jax.experimental.pallas import tpu as pltpu

MAX_STEPS = 16            # module uses MAX_STEPS * 2 input features
D_IN = MAX_STEPS * 2      # 32
HIDDEN = 100              # logical hidden size (as in the PyTorch module)
HIDDEN_PAD = 128          # lane-aligned hidden size used inside the kernel
D_OUT = 8
TB_MAX = 4096             # batch-tile upper bound (multiple of 128)


def _round_up(n, m):
    return ((n + m - 1) // m) * m


def _cdiv(a, b):
    return -(-a // b)


def _choose_tiling(batch):
    """Returns (tb, b_pad).

    Small batches: one full-extent tile (block dims == array dims, so the
    (8,128) divisibility rule does not bite and no 128-row padding is needed).
    Large batches: 128-aligned tiles, capped at TB_MAX, and >= 2 grid steps so
    both v7x TensorCores get work (harmless single-digit-step overhead on
    v5e/v6e).
    """
    if batch <= 256:
        b_pad = _round_up(batch, 8)
        return b_pad, b_pad
    n_tiles = max(2, _cdiv(batch, TB_MAX))
    tb = _round_up(_cdiv(batch, n_tiles), 128)
    return tb, n_tiles * tb


def simplenet_kernel(x_ref, w1_ref, b1_ref, w2t_ref, b2t_ref, o_ref):
    # x tile (TB, 32) f32 -> bf16 in-kernel (free: VPU slot has huge slack).
    x = x_ref[...].astype(jnp.bfloat16)

    # fc1 + ReLU: (TB, 32) @ (32, 128) -> (TB, 128), f32 accumulation.
    h = jnp.dot(x, w1_ref[...], preferred_element_type=jnp.float32) + b1_ref[...]
    h = jnp.maximum(h, 0.0).astype(jnp.bfloat16)              # (TB, 128)

    # fc2, transposed: logits^T (8, TB) = W2^T (8, 128) . h^T (128, TB).
    # RHS-transposed MXU matmul; zero-padded hidden rows of W2 pair with
    # exactly-zero h columns, so the padding is numerically exact.
    logits_t = jax.lax.dot_general(
        w2t_ref[...], h, (((1,), (1,)), ((), ())),
        preferred_element_type=jnp.float32) + b2t_ref[...]    # (8, TB)

    # Softmax over the 8 classes (sublane axis); batch stays lane-dense, so
    # exp / subtract / divide all run on fully packed vregs.
    m = jnp.max(logits_t, axis=0, keepdims=True)              # (1, TB)
    e = jnp.exp(logits_t - m)
    denom = jnp.sum(e, axis=0, keepdims=True)                 # (1, TB)
    # Exact divide: rows sum to 1 to f32 rounding (approx reciprocal did not).
    o_ref[...] = (e / denom).astype(o_ref.dtype)


def simplenet_forward(x, w1, b1, w2, b2):
    """x: (B, D_IN) f32; w1: (D_IN, HIDDEN); b1: (1, HIDDEN);
    w2: (HIDDEN, D_OUT); b2: (1, D_OUT).  Returns softmax probs (B, D_OUT) f32."""
    B = x.shape[0]
    tb, b_pad = _choose_tiling(B)
    if b_pad != B:
        # Only when B is unaligned; padded rows compute softmax(b2) and are
        # sliced off (no NaN risk).
        x = jnp.pad(x, ((0, b_pad - B), (0, 0)))

    pad_h = HIDDEN_PAD - HIDDEN
    w1p = jnp.pad(w1, ((0, 0), (0, pad_h))).astype(jnp.bfloat16)    # (32, 128)
    b1p = jnp.pad(b1, ((0, 0), (0, pad_h)))                         # (1, 128) f32
    w2t = jnp.pad(w2, ((0, pad_h), (0, 0))).T.astype(jnp.bfloat16)  # (8, 128)
    b2t = b2.T                                                      # (8, 1) f32

    grid = (b_pad // tb,)

    cost = pl.CostEstimate(
        flops=2 * b_pad * (D_IN * HIDDEN_PAD + HIDDEN_PAD * D_OUT),
        transcendentals=b_pad * D_OUT,
        bytes_accessed=(b_pad * D_IN * 4                  # x streamed as f32
                        + w1p.size * 2 + b1p.size * 4     # resident weights (once)
                        + w2t.size * 2 + b2t.size * 4
                        + D_OUT * b_pad * 4),             # lane-dense f32 output
    )

    out_t = pl.pallas_call(
        simplenet_kernel,
        out_shape=jax.ShapeDtypeStruct((D_OUT, b_pad), jnp.float32),
        grid=grid,
        in_specs=[
            pl.BlockSpec((tb, D_IN), lambda i: (i, 0)),           # x: streamed/pipelined
            pl.BlockSpec((D_IN, HIDDEN_PAD), lambda i: (0, 0)),   # weights: VMEM-resident
            pl.BlockSpec((1, HIDDEN_PAD), lambda i: (0, 0)),
            pl.BlockSpec((D_OUT, HIDDEN_PAD), lambda i: (0, 0)),
            pl.BlockSpec((D_OUT, 1), lambda i: (0, 0)),
        ],
        out_specs=pl.BlockSpec((D_OUT, tb), lambda i: (0, i)),    # lane-dense store
        compiler_params=pltpu.CompilerParams(
            dimension_semantics=("parallel",),   # shard batch tiles across TCs on v7x
            vmem_limit_bytes=32 << 20,           # ample even on v7x (64 MiB part)
        ),
        cost_estimate=cost,
        # TODO(synk): add pipeline_mode=pl.Buffered(3) on the x spec only if
        # profiling shows exposed input DMA after the tile enlargement.
    )(x, w1p, b1p, w2t, b2t)

    # Transpose the tiny (8, B) result back to PyTorch's (B, 8); slice only if
    # the batch was actually padded.
    out_t = out_t if b_pad == B else out_t[:, :B]
    return out_t.T


def init_params(key):
    # PyTorch Linear default init: U(-1/sqrt(fan_in), 1/sqrt(fan_in)),
    # stored pre-transposed relative to torch's (out, in) layout.
    k1, k2, k3, k4 = jax.random.split(key, 4)
    bound1 = 1.0 / jnp.sqrt(jnp.float32(D_IN))
    bound2 = 1.0 / jnp.sqrt(jnp.float32(HIDDEN))
    w1 = jax.random.uniform(k1, (D_IN, HIDDEN), jnp.float32, -bound1, bound1)
    b1 = jax.random.uniform(k2, (1, HIDDEN), jnp.float32, -bound1, bound1)
    w2 = jax.random.uniform(k3, (HIDDEN, D_OUT), jnp.float32, -bound2, bound2)
    b2 = jax.random.uniform(k4, (1, D_OUT), jnp.float32, -bound2, bound2)
    return w1, b1, w2, b2


def reference_forward(x, w1, b1, w2, b2):
    # Full-f32 reference matching the PyTorch module's forward semantics.
    h = jnp.maximum(x @ w1 + b1, 0.0)
    return jax.nn.softmax(h @ w2 + b2, axis=1)


if __name__ == "__main__":
    key = jax.random.PRNGKey(0)
    kx, kp = jax.random.split(key)
    B = 8                                        # small test batch (design targets B >> 1k)
    x = jax.random.normal(kx, (B, D_IN), jnp.float32)
    w1, b1, w2, b2 = init_params(kp)

    out = simplenet_forward(x, w1, b1, w2, b2)
    out = jax.block_until_ready(out)

    ref = reference_forward(x, w1, b1, w2, b2)
    assert out.shape == (B, D_OUT)
    # bf16 matmuls => loosened tolerance vs f32 reference; biases/softmax in f32.
    assert jnp.allclose(out, ref, atol=1e-2, rtol=5e-2), "mismatch vs reference"
    # Exact divide in the kernel: rows sum to 1 to f32 rounding.
    assert jnp.allclose(jnp.sum(out, axis=1), 1.0, atol=1e-3), "softmax rows must sum to 1"

    print("KERNEL_OK")
</pallas_src>

<mosaic_0001>
module attributes {stable_mosaic.version = 11 : i64} {
  func.func @simplenet_kernel(%arg0: i32, %arg1: memref<8x32xf32, #tpu.memory_space<vmem>>, %arg2: memref<32x128xbf16, #tpu.memory_space<vmem>>, %arg3: memref<1x128xf32, #tpu.memory_space<vmem>>, %arg4: memref<8x128xbf16, #tpu.memory_space<vmem>>, %arg5: memref<8x1xf32, #tpu.memory_space<vmem>>, %arg6: memref<8x8xf32, #tpu.memory_space<vmem>>) attributes {dimension_semantics = [#tpu.dimension_semantics<parallel>], iteration_bounds = array<i64: 1>, scalar_prefetch = 0 : i64, scratch_operands = 0 : i64, tpu.core_type = #tpu.core_type<tc>, window_params = [{transform_indices = @transform_0, window_bounds = array<i64: 8, 32>}, {pipeline_mode = #tpu.pipeline_mode<synchronous>, transform_indices = @transform_1, window_bounds = array<i64: 32, 128>}, {pipeline_mode = #tpu.pipeline_mode<synchronous>, transform_indices = @transform_2, window_bounds = array<i64: 1, 128>}, {pipeline_mode = #tpu.pipeline_mode<synchronous>, transform_indices = @transform_3, window_bounds = array<i64: 8, 128>}, {pipeline_mode = #tpu.pipeline_mode<synchronous>, transform_indices = @transform_4, window_bounds = array<i64: 8, 1>}, {transform_indices = @transform_5, window_bounds = array<i64: 8, 8>}]} {
    %c0 = arith.constant 0 : index
    %c0_0 = arith.constant 0 : index
    %0 = vector.load %arg1[%c0, %c0_0] : memref<8x32xf32, #tpu.memory_space<vmem>>, vector<8x32xf32>
    %1 = arith.truncf %0 : vector<8x32xf32> to vector<8x32xbf16>
    %c0_1 = arith.constant 0 : index
    %c0_2 = arith.constant 0 : index
    %2 = vector.load %arg2[%c0_1, %c0_2] : memref<32x128xbf16, #tpu.memory_space<vmem>>, vector<32x128xbf16>
    %cst = arith.constant dense<0.000000e+00> : vector<8x128xf32>
    %3 = tpu.matmul %1, %2, %cst {dimension_numbers = #tpu.dot_dimension_numbers<[1], [0], [0], [1], [0, 0, 1, 1], [], []>} : vector<8x32xbf16>, vector<32x128xbf16>, vector<8x128xf32> -> vector<8x128xf32>
    %c0_3 = arith.constant 0 : index
    %c0_4 = arith.constant 0 : index
    %4 = vector.load %arg3[%c0_3, %c0_4] : memref<1x128xf32, #tpu.memory_space<vmem>>, vector<1x128xf32>
    %5 = vector.broadcast %4 : vector<1x128xf32> to vector<8x128xf32>
    %6 = arith.addf %3, %5 : vector<8x128xf32>
    %cst_5 = arith.constant 0.000000e+00 : f32
    %7 = vector.broadcast %cst_5 : f32 to vector<8x128xf32>
    %8 = arith.maximumf %6, %7 : vector<8x128xf32>
    %9 = arith.truncf %8 : vector<8x128xf32> to vector<8x128xbf16>
    %c0_6 = arith.constant 0 : index
    %c0_7 = arith.constant 0 : index
    %10 = vector.load %arg4[%c0_6, %c0_7] : memref<8x128xbf16, #tpu.memory_space<vmem>>, vector<8x128xbf16>
    %cst_8 = arith.constant dense<0.000000e+00> : vector<8x8xf32>
    %11 = tpu.matmul %10, %9, %cst_8 {dimension_numbers = #tpu.dot_dimension_numbers<[1], [1], [0], [0], [0, 0, 1, 0], [], []>} : vector<8x128xbf16>, vector<8x128xbf16>, vector<8x8xf32> -> vector<8x8xf32>
    %c0_9 = arith.constant 0 : index
    %c0_10 = arith.constant 0 : index
    %12 = vector.load %arg5[%c0_9, %c0_10] : memref<8x1xf32, #tpu.memory_space<vmem>>, vector<8x1xf32>
    %13 = vector.broadcast %12 : vector<8x1xf32> to vector<8x8xf32>
    %14 = arith.addf %11, %13 : vector<8x8xf32>
    %cst_11 = arith.constant dense<0xFF800000> : vector<8xf32>
    %15 = vector.multi_reduction <maximumf>, %14, %cst_11 [0] : vector<8x8xf32> to vector<8xf32>
    %16 = vector.shape_cast %15 : vector<8xf32> to vector<1x8xf32>
    %17 = vector.broadcast %16 : vector<1x8xf32> to vector<8x8xf32>
    %18 = arith.subf %14, %17 : vector<8x8xf32>
    %19 = math.exp %18 : vector<8x8xf32>
    %cst_12 = arith.constant dense<0.000000e+00> : vector<8xf32>
    %20 = vector.multi_reduction <add>, %19, %cst_12 [0] : vector<8x8xf32> to vector<8xf32>
    %21 = vector.shape_cast %20 : vector<8xf32> to vector<1x8xf32>
    %22 = vector.broadcast %21 : vector<1x8xf32> to vector<8x8xf32>
    %23 = arith.divf %19, %22 : vector<8x8xf32>
    %c0_13 = arith.constant 0 : index
    %c0_14 = arith.constant 0 : index
    %24 = vector.load %arg6[%c0_13, %c0_14] : memref<8x8xf32, #tpu.memory_space<vmem>>, vector<8x8xf32>
    tpu.vector_store %arg6[%c0_13, %c0_14], %23 {strides = array<i32>} : memref<8x8xf32, #tpu.memory_space<vmem>>, vector<8x8xf32>,
    return
  }
  func.func @transform_0(%arg0: i32) -> (i32, i32) {
    %c0_i32 = arith.constant 0 : i32
    %c0_i32_0 = arith.constant 0 : i32
    return %arg0, %c0_i32 : i32, i32
  }
  func.func @transform_1(%arg0: i32) -> (i32, i32) {
    %c0_i32 = arith.constant 0 : i32
    %c0_i32_0 = arith.constant 0 : i32
    %c0_i32_1 = arith.constant 0 : i32
    return %c0_i32, %c0_i32_0 : i32, i32
  }
  func.func @transform_2(%arg0: i32) -> (i32, i32) {
    %c0_i32 = arith.constant 0 : i32
    %c0_i32_0 = arith.constant 0 : i32
    %c0_i32_1 = arith.constant 0 : i32
    return %c0_i32, %c0_i32_0 : i32, i32
  }
  func.func @transform_3(%arg0: i32) -> (i32, i32) {
    %c0_i32 = arith.constant 0 : i32
    %c0_i32_0 = arith.constant 0 : i32
    %c0_i32_1 = arith.constant 0 : i32
    return %c0_i32, %c0_i32_0 : i32, i32
  }
  func.func @transform_4(%arg0: i32) -> (i32, i32) {
    %c0_i32 = arith.constant 0 : i32
    %c0_i32_0 = arith.constant 0 : i32
    %c0_i32_1 = arith.constant 0 : i32
    return %c0_i32, %c0_i32_0 : i32, i32
  }
  func.func @transform_5(%arg0: i32) -> (i32, i32) {
    %c0_i32 = arith.constant 0 : i32
    %c0_i32_0 = arith.constant 0 : i32
    return %c0_i32, %arg0 : i32, i32
  }
}

</mosaic_0001>

<bundles_post_ra>
// kernel: tpu_custom_call.1
= control target key start
LH: loop header
LB: loop body
LE: loop exit
PB: predicated region body
PF: predicated region fallthrough
CT: control target
= control target key end

     0   :  { %10 = vsyncpa [#allocation3], 0  ;;  %s351_s0 = inlined_call_operand.vmem [shape: f32[8,32], index: 0, kind: input, shape index: {}]   ;;  %s352_s1 = inlined_call_operand.hbm [shape: bf16[32,128], index: 1, kind: input, shape index: {}]   ;;  %s353_s2 = inlined_call_operand.vmem [shape: f32[1,128], index: 2, kind: input, shape index: {}]   ;;  %s354_s3 = inlined_call_operand.vmem [shape: bf16[8,128], index: 3, kind: input, shape index: {}]   ;;  %s355_s4 = inlined_call_operand.vmem [shape: f32[8,1], index: 4, kind: input, shape index: {}]   ;;  %s356_s5 = inlined_call_operand.hbm [shape: f32[8,8], index: 5, kind: output, shape index: {}]  }
   0x1   :  { %11 = vsyncpa [#allocation4], 0  ;;  %s275_s18 = smov [#allocation2]   ;;  %s227_s22 = scalar_lea.hbm %s352_s1, 256 }
   0x2   :  { %s19_s19 = sshll.u32 %s275_s18, 4  ;;  %p228_p0 = scmp.ne.s32.totalorder %s352_s1, %s227_s22  ;;  %s20_s19 = int_to_ptr.vmem [resolvable:$true] %s19_s19 }
   0x3   :  { %p231_p1 = scmp.lt.u32.totalorder %s227_s22, %s352_s1 }
   0x5   :  { %p233_p2 = pnand %p231_p1, %p228_p0 }
   0x7   :  { %236 = shalt.err (!%p233_p2)
}
   0x8   :  { %s237_s27 = scalar_lea.vmem %s20_s19, 256  ;;  %p242_p4 = scmp.lt.s32.totalorder %s20_s19, %s20_s19 }
   0x9   :  { %p238_p3 = scmp.ne.s32.totalorder %s20_s19, %s237_s27  ;;  %p243_p5 = scmp.lt.s32.totalorder %s237_s27, %s237_s27 }
   0xb   :  { %p244_p6 = por %p243_p5, %p242_p4 }
   0xd   :  { %p245_p7 = pnand %p244_p6, %p238_p3 }
   0xf   :  { %248 = shalt.err (!%p245_p7)
}
  0x10   :  { %s276_s28 = smov 64   ;;  %s277_s29 = smov 4  }
  0x11   :  { %25 = dma.hbm_to_vmem [thread:$0]  %s352_s1, 256, %s20_s19, [#allocation3], %s276_s28, %s276_s28, %s277_s29  }
  0x12   :  { %271 = dma.done.wait [#allocation3], 256  }
  0x13   :  { %272 = vsyncadd [#allocation3], 4294967040  ;;  %v278_v0 = vmov 0.0   ;;  %vm279_vm0 = vmmov 0   ;;  %v221_v1 = vld [vmem:[#allocation2] sm:$0xff]   ;;  %v222_v2 = vld [vmem:[#allocation2 + $0x8] sm:$0xff]  }
  0x14   :  { %199 = vmatprep.subr.bf16.mxu0 %v278_v0  ;;  %203 = vmatprep.mubr.msk.bf16.mxu0 %vm279_vm0, %v278_v0  ;;  %v36_v3 = vld [vmem:[%s351_s0] sm:$0xff]  ;;  %vm61_vm1 = vcmask 261120   ;;  %v280_v6 = vmov 0   ;;  %vm154_vm2 = vcmask 64512  }
  0x15   :  { %207 = vmatprep.subr.bf16.mxu1 %v278_v0  ;;  %209 = vmatprep.mubr.msk.bf16.mxu1 %vm279_vm0, %v278_v0  ;;  %v37_v4 = vpack.c.bf16 %v36_v3, %v36_v3  ;;  %v108_v5 = vld [vmem:[%s355_s4] sm:$0xff] }
  0x16   :  { %200 = vmatpush3.bf16.msra.mxu0 %v221_v1  ;;  %220 = vset.pattern.permute.xlu0 %v280_v6  ;;  %v190_v7 = vld [vmem:[%s353_s2] ss:$0 sm:$0xff]  ;;  %s281_s2 = smov [#allocation5]  }
  0x17   :  { %201 = vmatprep.subr.bf16.mxu0 %v278_v0  ;;  %111 = vperm.xlu0 %220, %v108_v5   ;;  %v107_v15 = vld [vmem:[%s354_s3] sm:$0xf]  ;;  %s181_s3 = sshll.u32 %s281_s2, 4  ;;  %s182_s3 = int_to_ptr.vmem [resolvable:$true] %s181_s3 }
  0x18   :  { %s249_s4 = scalar_lea.vmem %s182_s3, 128  ;;  %p254_p9 = scmp.lt.s32.totalorder %s182_s3, %s182_s3 }
  0x19   :  { %p250_p8 = scmp.ne.s32.totalorder %s182_s3, %s249_s4  ;;  %p255_p10 = scmp.lt.s32.totalorder %s249_s4, %s249_s4 }
  0x1a   :  { %202 = vmatpush3.bf16.msra.mxu0 %v222_v2 }
  0x1b   :  { %p256_p11 = por %p255_p10, %p254_p9 }
  0x1d   :  { %204 = vmatmul.mubr.msk.bf16.vlgmr.msra.gmra.mrb[0].mxu0 %vm61_vm1, %v37_v4  ;;  %p257_p12 = pnand %p256_p11, %p250_p8 }
  0x96   :  { %v112_v16 = vpop.permute.xlu0 %111 }
  0xf0   :  { %v99_v8 = vpop.f32.mrb[0].mxu0 }
  0xf1   :  { %v100_v9 = vadd.f32 %v190_v7, %v99_v8  ;;  %v205_v10 = vpop.f32.mrb[1].mxu0 }
  0xf2   :  { %v102_v11 = vpop.f32.mrb[2].mxu0 }
  0xf3   :  { %v105_v12 = vmax.f32 %v100_v9, 0.0  ;;  %v206_v13 = vpop.f32.mrb[3].mxu0 }
  0xf5   :  { %v106_v14 = vpack.c.bf16 %v105_v12, %v105_v12 }
  0xf7   :  { %208 = vmatpush3.bf16.xpose.msra.mxu1 %v106_v14 }
  0xfe   :  { %210 = vmatmul.mubr.bf16.vlgmr.msra.gmra.mrb[0].mxu1 %v107_v15 }
 0x1d1   :  { %v148_v17 = vpop.f32.mrb[0].mxu1 }
 0x1d2   :  { %v149_v18 = vadd.f32 %v148_v17, %v112_v16  ;;  %v211_v19 = vpop.f32.mrb[1].mxu1 }
 0x1d3   :  { %v151_v20 = vpop.f32.mrb[2].mxu1 }
 0x1d4   :  { %v155_v21 = vsel %vm154_vm2, %v149_v18, -inf  ;;  %v212_v22 = vpop.f32.mrb[3].mxu1 }
 0x1d5   :  { %v156_v23 = vrot.slane %v155_v21, 4 }
 0x1d7   :  { %v157_v24 = vmax.f32 %v155_v21, %v156_v23 }
 0x1d9   :  { %v158_v25 = vrot.slane %v157_v24, 2 }
 0x1db   :  { %v159_v26 = vmax.f32 %v157_v24, %v158_v25 }
 0x1dd   :  { %v160_v27 = vrot.slane %v159_v26, 1 }
 0x1df   :  { %v161_v28 = vmax.f32 %v159_v26, %v160_v27 }
 0x1e1   :  { %v162_v29 = vsub.f32 %v149_v18, %v161_v28 }
 0x1e3   :  { %v163_v30 = vmul.f32 1.442695, %v162_v29 }
 0x1e5   :  { %223 = vpow2.f32 %v163_v30 }
 0x1ef   :  { %v224_v31 = vpop.eup %223 }
 0x1f0   :  { %v165_v32 = vsel %vm154_vm2, %v224_v31, 0.0 }
 0x1f1   :  { %v166_v33 = vrot.slane %v165_v32, 4 }
 0x1f3   :  { %v167_v34 = vadd.f32 %v166_v33, %v165_v32 }
 0x1f5   :  { %v168_v35 = vrot.slane %v167_v34, 2 }
 0x1f7   :  { %v169_v36 = vadd.f32 %v168_v35, %v167_v34 }
 0x1f9   :  { %v170_v37 = vrot.slane %v169_v36, 1 }
 0x1fb   :  { %v171_v38 = vadd.f32 %v170_v37, %v169_v36 }
 0x1fd   :  { %225 = vrcp.f32 %v171_v38 }
 0x207   :  { %v226_v39 = vpop.eup %225 }
 0x208   :  { %v173_v40 = vmul.f32 %v226_v39, %v224_v31 }
 0x20a   :  { %174 = vst.msk [vmem:[#allocation5] sm:$0xff] %vm154_vm2, %v173_v40 }
 0x20b   :  { %260 = shalt.err (!%p257_p12)
}
 0x20c   :  { %s261_s15 = scalar_lea.hbm %s356_s5, 128 }
 0x20d   :  { %p262_p13 = scmp.ne.s32.totalorder %s356_s5, %s261_s15  ;;  %p265_p0 = scmp.lt.u32.totalorder %s261_s15, %s356_s5 }
 0x20f   :  { %p267_p1 = pnand %p265_p0, %p262_p13 }
 0x211   :  { %270 = shalt.err (!%p267_p1)
}
 0x212   :  { %184 = dma.vmem_to_hbm [thread:$0]  %s182_s3, 128, %s356_s5, [#allocation4]  }
 0x213   :  { %273 = dma.done.wait [#allocation4], 128  }
 0x214   :  { %274 = vsyncadd [#allocation4], 4294967168 }
 0x215   :  { %188 = vsyncpa [#allocation3], 1 }
 0x216   :  { %189 = vsyncpa [#allocation4], 1 }

</bundles_post_ra>
